<compile_context>
chip_gen: v5e
topology: v5e:2x2
jax: 0.10.0
libtpu: 0.0.40
codegen_flags: <defaults>
</compile_context>

<pallas_src>
import functools

import jax
import jax.numpy as jnp
from jax import lax
from jax.experimental import pallas as pl
from jax.experimental.pallas import tpu as pltpu


def _tv_kernel(x_ref, h_out_ref, w_out_ref, acc_h_ref, acc_w_ref, carry_ref,
               *, H, W, TH, n_h, mask_rows):
    """One (channel-tile, row-tile) step of the TV-loss reduction.

    x_ref     : (TC, TH, W) VMEM input tile
    h_out_ref : (1, 1, 1) per-channel-tile vertical partial sum (written once)
    w_out_ref : (1, 1, 1) per-channel-tile horizontal partial sum
    acc_h_ref : (1, W) f32 vertical partials (within-tile + tile boundary)
    acc_w_ref : (1, W) f32 horizontal partials (wrap column dropped at end)
    carry_ref : (TC, 1, W) f32 last row of the previous row tile
    """
    hi = pl.program_id(1)          # row-tile index ("arbitrary", innermost)

    @pl.when(hi == 0)
    def _init():
        acc_h_ref[...] = jnp.zeros_like(acc_h_ref)
        acc_w_ref[...] = jnp.zeros_like(acc_w_ref)

    x = x_ref[...].astype(jnp.float32)                   # (TC, TH, W)

    if mask_rows:
        # Rare fallback (H % TH != 0): zero the padded rows of the last row
        # tile so their (possibly NaN/Inf) garbage cannot reach the
        # accumulators.  Must be a select (NaN * 0 == NaN), applied pre-square.
        row = hi * TH + lax.broadcasted_iota(jnp.int32, x.shape, 1)
        x = jnp.where(row < H, x, 0.0)

    # ---- horizontal (W-axis) diffs: one XLU lane roll, no per-step mask ----
    # x_n[..., c] == x[..., (c+1) mod W]; the wrap column W-1 is dropped once
    # per channel tile in _finalize below.
    x_n = pltpu.roll(x, shift=W - 1, axis=2)
    dw = x_n - x
    dw2 = jnp.sum(dw * dw, axis=0)                       # (TH, W)  VALU adds
    acc_w_ref[...] += jnp.sum(dw2, axis=0, keepdims=True)  # XLU sublane reduce

    # ---- vertical (H-axis) diffs within this row tile ----------------------
    if TH > 1:
        d = x[:, 1:, :] - x[:, :-1, :]                   # (TC, TH-1, W)
        if mask_rows:
            top = hi * TH + lax.broadcasted_iota(jnp.int32, d.shape, 1)
            d = jnp.where(top + 1 < H, d, 0.0)           # drop pairs crossing H
        d2 = jnp.sum(d * d, axis=0)                      # (TH-1, W)
        acc_h_ref[...] += jnp.sum(d2, axis=0, keepdims=True)

    # ---- vertical diff across the row-tile boundary (carried last row) -----
    if n_h > 1:
        @pl.when(hi > 0)
        def _boundary():
            d0 = x[:, 0:1, :] - carry_ref[...]           # (TC, 1, W)
            acc_h_ref[...] += jnp.sum(d0 * d0, axis=0)   # (1, W)
        carry_ref[...] = x[:, TH - 1:TH, :]

    # ---- single cross-lane reduce per channel tile --------------------------
    @pl.when(hi == n_h - 1)
    def _finalize():
        col = lax.broadcasted_iota(jnp.int32, (1, W), 1)
        w_acc = jnp.where(col < W - 1, acc_w_ref[...], 0.0)   # drop wrap column
        h_out_ref[...] = jnp.sum(acc_h_ref[...]).reshape(1, 1, 1)
        w_out_ref[...] = jnp.sum(w_acc).reshape(1, 1, 1)


def _vmem_capacity_bytes():
    try:
        cap = getattr(pltpu.get_tpu_info(), "vmem_capacity_bytes", None)
        if cap:
            return int(cap)
    except Exception:
        pass
    return 64 * 1024 * 1024          # conservative (v7x per-TC); safe everywhere


def _choose_tiles(C, H, W, itemsize, block_bytes):
    """Pick (TC, TH) so one (TC, TH, W) block is ~block_bytes, TC always
    divides C, TH divides H whenever possible (else masked fallback), and
    n_c >= 2 when C >= 2 so both v7x TensorCores get channel tiles."""
    bytes_per_chan = H * W * itemsize
    if bytes_per_chan <= block_bytes:
        max_tc = max(1, block_bytes // bytes_per_chan)
        if C >= 2:
            max_tc = min(max_tc, C // 2)     # keep >= 2 channel tiles
        tc = 1
        for d in range(1, C + 1):
            if C % d == 0 and d <= max_tc:
                tc = d
        return tc, H
    # A single channel exceeds the budget: tile rows (TC = 1).
    rows = max(8, (block_bytes // (W * itemsize)) // 8 * 8)
    rows = min(rows, H)
    for th in range(rows - rows % 8, 7, -8):  # prefer TH | H (no masks)
        if H % th == 0:
            return 1, th
    return 1, rows                            # masked partial last tile


def tv_loss(x, loss_weight=1.0, block_bytes=None):
    """x: (C, H, W) array. Returns scalar TV loss matching the PyTorch module.

    Note: like the PyTorch module, H == 1 or W == 1 divides by zero.
    """
    C, H, W = x.shape
    cap = _vmem_capacity_bytes()
    if block_bytes is None:
        # ~4 MiB blocks on 128-MiB-VMEM parts (v5e/v6e), ~2 MiB on v7x (64 MiB).
        block_bytes = (4 << 20) if cap >= (96 << 20) else (2 << 20)
    vmem_limit = min(int(cap) * 3 // 4, 96 * 1024 * 1024)

    itemsize = jnp.dtype(x.dtype).itemsize
    TC, TH = _choose_tiles(C, H, W, itemsize, block_bytes)
    n_c = pl.cdiv(C, TC)                      # TC | C, so this is exact
    n_h = pl.cdiv(H, TH)
    mask_rows = (H % TH) != 0

    kernel = functools.partial(_tv_kernel, H=H, W=W, TH=TH,
                               n_h=n_h, mask_rows=mask_rows)

    h_part, w_part = pl.pallas_call(
        kernel,
        out_shape=(
            jax.ShapeDtypeStruct((n_c, 1, 1), jnp.float32),
            jax.ShapeDtypeStruct((n_c, 1, 1), jnp.float32),
        ),
        grid_spec=pltpu.PrefetchScalarGridSpec(
            num_scalar_prefetch=0,
            grid=(n_c, n_h),
            in_specs=[pl.BlockSpec((TC, TH, W), lambda ci, hi: (ci, hi, 0))],
            out_specs=(
                pl.BlockSpec((1, 1, 1), lambda ci, hi: (ci, 0, 0)),
                pl.BlockSpec((1, 1, 1), lambda ci, hi: (ci, 0, 0)),
            ),
            scratch_shapes=[
                pltpu.VMEM((1, W), jnp.float32),       # acc_h
                pltpu.VMEM((1, W), jnp.float32),       # acc_w
                pltpu.VMEM((TC, 1, W), jnp.float32),   # carried last row
            ],
        ),
        compiler_params=pltpu.CompilerParams(
            # Channel tiles parallel (v7x dual-TC); row tiles sequential so the
            # carried boundary row and the VMEM accumulators stay correct.
            dimension_semantics=("parallel", "arbitrary"),
            vmem_limit_bytes=vmem_limit,
        ),
    )(x)

    # Tiny final reduction over per-channel-tile partials in plain JAX.
    h_tv = jnp.sum(h_part)
    w_tv = jnp.sum(w_part)

    batch_size = 1                   # x.unsqueeze(0) -> leading batch of 1
    count_h = C * (H - 1) * W
    count_w = C * H * (W - 1)
    return loss_weight * 2.0 * (h_tv / count_h + w_tv / count_w) / batch_size


def tv_loss_ref(x, loss_weight=1.0):
    """Pure-JAX reference mirroring the PyTorch forward exactly."""
    x = x[None]  # (1, C, H, W)
    h_x, w_x = x.shape[2], x.shape[3]
    count_h = x.shape[1] * (h_x - 1) * x.shape[3]
    count_w = x.shape[1] * x.shape[2] * (w_x - 1)
    h_tv = jnp.sum((x[:, :, 1:, :] - x[:, :, : h_x - 1, :]) ** 2)
    w_tv = jnp.sum((x[:, :, :, 1:] - x[:, :, :, : w_x - 1]) ** 2)
    return loss_weight * 2.0 * (h_tv / count_h + w_tv / count_w) / x.shape[0]


if __name__ == "__main__":
    key = jax.random.PRNGKey(0)
    loss_weight = 1.0  # TVLoss.__init__ default

    # (shape, dtype, block_bytes): small shapes; tiny block budgets force the
    # multi-tile paths (row tiling with a carried boundary row, masked partial
    # last row tile, multiple parallel channel tiles, bf16 input).
    cases = [
        ((4, 64, 128), jnp.float32, None),    # channel tiling: TC=2, n_c=2, n_h=1
        ((3, 32, 128), jnp.float32, 8192),    # row tiling TH | H: carried boundary
        ((2, 36, 128), jnp.float32, 8192),    # masked fallback: partial last tile
        ((4, 64, 128), jnp.bfloat16, None),   # bf16 input (f32 cast in-kernel)
    ]

    for i, (shape, dtype, bb) in enumerate(cases):
        key, sub = jax.random.split(key)
        xf = jax.random.normal(sub, shape, dtype=jnp.float32)
        x = xf.astype(dtype)
        out = jax.block_until_ready(tv_loss(x, loss_weight, block_bytes=bb))
        ref = jax.block_until_ready(
            tv_loss_ref(x.astype(jnp.float32), loss_weight))
        assert jnp.allclose(out, ref, rtol=1e-4, atol=1e-5), (i, out, ref)

    print("KERNEL_OK")
</pallas_src>

<mosaic_0001>
module attributes {stable_mosaic.version = 11 : i64} {
  func.func @_tv_kernel(%arg0: i32, %arg1: i32, %arg2: memref<2x64x128xf32, #tpu.memory_space<vmem>>, %arg3: memref<1x1x1xf32, #tpu.memory_space<vmem>>, %arg4: memref<1x1x1xf32, #tpu.memory_space<vmem>>, %arg5: memref<1x128xf32, #tpu.memory_space<vmem>>, %arg6: memref<1x128xf32, #tpu.memory_space<vmem>>, %arg7: memref<2x1x128xf32, #tpu.memory_space<vmem>>) attributes {dimension_semantics = [#tpu.dimension_semantics<parallel>, #tpu.dimension_semantics<arbitrary>], iteration_bounds = array<i64: 2, 1>, scalar_prefetch = 0 : i64, scratch_operands = 3 : i64, tpu.core_type = #tpu.core_type<tc>, window_params = [{transform_indices = @transform_0, window_bounds = array<i64: 2, 64, 128>}, {transform_indices = @transform_1, window_bounds = array<i64: 1, 1, 1>}, {transform_indices = @transform_2, window_bounds = array<i64: 1, 1, 1>}]} {
    %c0_i32 = arith.constant 0 : i32
    %0 = arith.cmpi eq, %arg1, %c0_i32 : i32
    %1 = arith.extui %0 : i1 to i32
    %c0_i32_0 = arith.constant 0 : i32
    %2 = arith.cmpi ne, %1, %c0_i32_0 : i32
    scf.if %2 {
      %cst_16 = arith.constant 0.000000e+00 : f32
      %26 = vector.broadcast %cst_16 : f32 to vector<1x128xf32>
      %c0_17 = arith.constant 0 : index
      %c0_18 = arith.constant 0 : index
      %27 = vector.load %arg5[%c0_17, %c0_18] : memref<1x128xf32, #tpu.memory_space<vmem>>, vector<1x128xf32>
      tpu.vector_store %arg5[%c0_17, %c0_18], %26 {strides = array<i32>} : memref<1x128xf32, #tpu.memory_space<vmem>>, vector<1x128xf32>,
      %cst_19 = arith.constant 0.000000e+00 : f32
      %28 = vector.broadcast %cst_19 : f32 to vector<1x128xf32>
      %c0_20 = arith.constant 0 : index
      %c0_21 = arith.constant 0 : index
      %29 = vector.load %arg6[%c0_20, %c0_21] : memref<1x128xf32, #tpu.memory_space<vmem>>, vector<1x128xf32>
      tpu.vector_store %arg6[%c0_20, %c0_21], %28 {strides = array<i32>} : memref<1x128xf32, #tpu.memory_space<vmem>>, vector<1x128xf32>,
    } else {
    }
    %c0 = arith.constant 0 : index
    %c0_1 = arith.constant 0 : index
    %c0_2 = arith.constant 0 : index
    %3 = vector.load %arg2[%c0, %c0_1, %c0_2] : memref<2x64x128xf32, #tpu.memory_space<vmem>>, vector<2x64x128xf32>
    %c127_i32 = arith.constant 127 : i32
    %4 = tpu.dynamic_rotate %3 by %c127_i32 dim 2 : vector<2x64x128xf32>, i32 -> vector<2x64x128xf32>
    %5 = arith.subf %4, %3 : vector<2x64x128xf32>
    %6 = arith.mulf %5, %5 : vector<2x64x128xf32>
    %cst = arith.constant dense<0.000000e+00> : vector<64x128xf32>
    %7 = vector.multi_reduction <add>, %6, %cst [0] : vector<2x64x128xf32> to vector<64x128xf32>
    %c0_3 = arith.constant 0 : index
    %c0_4 = arith.constant 0 : index
    %8 = vector.load %arg6[%c0_3, %c0_4] : memref<1x128xf32, #tpu.memory_space<vmem>>, vector<1x128xf32>
    %cst_5 = arith.constant dense<0.000000e+00> : vector<128xf32>
    %9 = vector.multi_reduction <add>, %7, %cst_5 [0] : vector<64x128xf32> to vector<128xf32>
    %10 = vector.shape_cast %9 : vector<128xf32> to vector<1x128xf32>
    %11 = arith.addf %8, %10 : vector<1x128xf32>
    %c0_6 = arith.constant 0 : index
    %c0_7 = arith.constant 0 : index
    %12 = vector.load %arg6[%c0_6, %c0_7] : memref<1x128xf32, #tpu.memory_space<vmem>>, vector<1x128xf32>
    tpu.vector_store %arg6[%c0_6, %c0_7], %11 {strides = array<i32>} : memref<1x128xf32, #tpu.memory_space<vmem>>, vector<1x128xf32>,
    %13 = vector.extract_strided_slice %3 {offsets = [0, 1, 0], sizes = [2, 63, 128], strides = [1, 1, 1]} : vector<2x64x128xf32> to vector<2x63x128xf32>
    %14 = vector.extract_strided_slice %3 {offsets = [0, 0, 0], sizes = [2, 63, 128], strides = [1, 1, 1]} : vector<2x64x128xf32> to vector<2x63x128xf32>
    %15 = arith.subf %13, %14 : vector<2x63x128xf32>
    %16 = arith.mulf %15, %15 : vector<2x63x128xf32>
    %cst_8 = arith.constant dense<0.000000e+00> : vector<63x128xf32>
    %17 = vector.multi_reduction <add>, %16, %cst_8 [0] : vector<2x63x128xf32> to vector<63x128xf32>
    %c0_9 = arith.constant 0 : index
    %c0_10 = arith.constant 0 : index
    %18 = vector.load %arg5[%c0_9, %c0_10] : memref<1x128xf32, #tpu.memory_space<vmem>>, vector<1x128xf32>
    %cst_11 = arith.constant dense<0.000000e+00> : vector<128xf32>
    %19 = vector.multi_reduction <add>, %17, %cst_11 [0] : vector<63x128xf32> to vector<128xf32>
    %20 = vector.shape_cast %19 : vector<128xf32> to vector<1x128xf32>
    %21 = arith.addf %18, %20 : vector<1x128xf32>
    %c0_12 = arith.constant 0 : index
    %c0_13 = arith.constant 0 : index
    %22 = vector.load %arg5[%c0_12, %c0_13] : memref<1x128xf32, #tpu.memory_space<vmem>>, vector<1x128xf32>
    tpu.vector_store %arg5[%c0_12, %c0_13], %21 {strides = array<i32>} : memref<1x128xf32, #tpu.memory_space<vmem>>, vector<1x128xf32>,
    %c0_i32_14 = arith.constant 0 : i32
    %23 = arith.cmpi eq, %arg1, %c0_i32_14 : i32
    %24 = arith.extui %23 : i1 to i32
    %c0_i32_15 = arith.constant 0 : i32
    %25 = arith.cmpi ne, %24, %c0_i32_15 : i32
    scf.if %25 {
      %26 = tpu.iota {dimensions = array<i32: 1>} : vector<1x128xi32>
      %c127_i32_16 = arith.constant 127 : i32
      %27 = vector.broadcast %c127_i32_16 : i32 to vector<1x128xi32>
      %28 = arith.cmpi slt, %26, %27 : vector<1x128xi32>
      %c0_17 = arith.constant 0 : index
      %c0_18 = arith.constant 0 : index
      %29 = vector.load %arg6[%c0_17, %c0_18] : memref<1x128xf32, #tpu.memory_space<vmem>>, vector<1x128xf32>
      %cst_19 = arith.constant 0.000000e+00 : f32
      %30 = vector.broadcast %cst_19 : f32 to vector<1x128xf32>
      %31 = arith.select %28, %29, %30 : vector<1x128xi1>, vector<1x128xf32>
      %c0_20 = arith.constant 0 : index
      %c0_21 = arith.constant 0 : index
      %32 = vector.load %arg5[%c0_20, %c0_21] : memref<1x128xf32, #tpu.memory_space<vmem>>, vector<1x128xf32>
      %33 = vector.shape_cast %32 : vector<1x128xf32> to vector<1x1x128xf32>
      %cst_22 = arith.constant dense<0.000000e+00> : vector<1xf32>
      %34 = vector.multi_reduction <add>, %33, %cst_22 [1, 2] : vector<1x1x128xf32> to vector<1xf32>
      %35 = vector.shape_cast %34 : vector<1xf32> to vector<1x1x1xf32>
      %36 = vector.extract %35[0, 0, 0] : f32 from vector<1x1x1xf32>
      %37 = vector.broadcast %36 : f32 to vector<1x1x1xf32>
      %c0_23 = arith.constant 0 : index
      %c0_24 = arith.constant 0 : index
      %c0_25 = arith.constant 0 : index
      %38 = vector.load %arg3[%c0_23, %c0_24, %c0_25] : memref<1x1x1xf32, #tpu.memory_space<vmem>>, vector<1x1x1xf32>
      tpu.vector_store %arg3[%c0_23, %c0_24, %c0_25], %37 {strides = array<i32>} : memref<1x1x1xf32, #tpu.memory_space<vmem>>, vector<1x1x1xf32>,
      %39 = vector.shape_cast %31 : vector<1x128xf32> to vector<1x1x128xf32>
      %cst_26 = arith.constant dense<0.000000e+00> : vector<1xf32>
      %40 = vector.multi_reduction <add>, %39, %cst_26 [1, 2] : vector<1x1x128xf32> to vector<1xf32>
      %41 = vector.shape_cast %40 : vector<1xf32> to vector<1x1x1xf32>
      %42 = vector.extract %41[0, 0, 0] : f32 from vector<1x1x1xf32>
      %43 = vector.broadcast %42 : f32 to vector<1x1x1xf32>
      %c0_27 = arith.constant 0 : index
      %c0_28 = arith.constant 0 : index
      %c0_29 = arith.constant 0 : index
      %44 = vector.load %arg4[%c0_27, %c0_28, %c0_29] : memref<1x1x1xf32, #tpu.memory_space<vmem>>, vector<1x1x1xf32>
      tpu.vector_store %arg4[%c0_27, %c0_28, %c0_29], %43 {strides = array<i32>} : memref<1x1x1xf32, #tpu.memory_space<vmem>>, vector<1x1x1xf32>,
    } else {
    }
    return
  }
  func.func @transform_0(%arg0: i32, %arg1: i32) -> (i32, i32, i32) {
    %c0_i32 = arith.constant 0 : i32
    %c0_i32_0 = arith.constant 0 : i32
    return %arg0, %arg1, %c0_i32 : i32, i32, i32
  }
  func.func @transform_1(%arg0: i32, %arg1: i32) -> (i32, i32, i32) {
    %c0_i32 = arith.constant 0 : i32
    %c0_i32_0 = arith.constant 0 : i32
    %c0_i32_1 = arith.constant 0 : i32
    return %arg0, %c0_i32, %c0_i32_0 : i32, i32, i32
  }
  func.func @transform_2(%arg0: i32, %arg1: i32) -> (i32, i32, i32) {
    %c0_i32 = arith.constant 0 : i32
    %c0_i32_0 = arith.constant 0 : i32
    %c0_i32_1 = arith.constant 0 : i32
    return %arg0, %c0_i32, %c0_i32_0 : i32, i32, i32
  }
}

</mosaic_0001>

<bundles_post_ra>
// kernel: tpu_custom_call.1
= control target key start
LH: loop header
LB: loop body
LE: loop exit
PB: predicated region body
PF: predicated region fallthrough
CT: control target
= control target key end

     0   :  { %8 = vsyncpa [#allocation6], 0  ;;  %s1009_s0 = inlined_call_operand.hbm [shape: f32[4,64,128], index: 0, kind: input, shape index: {}]   ;;  %s1010_s1 = inlined_call_operand.vmem [shape: f32[2,1,1], index: 1, kind: output, shape index: {0}]   ;;  %s1011_s2 = inlined_call_operand.vmem [shape: f32[2,1,1], index: 2, kind: output, shape index: {1}]  }
   0x1   :  { %10 = vsyncpa [#allocation6 + $0x1], 0  ;;  %s762_s9 = smov 0   ;;  %s764_s10 = smov 0  }
   0x2   :  { %s766_s11 = smov 0   ;;  %s768_s12 = smov 0  }
   0x3   :  { %s770_s13 = smov 0   ;;  %s772_s14 = smov 0  }
   0x4 LB: > { %s584_s15 = sadd.s32 4294967295, %s741_s14   ;;  %s28_s16 = sadd.s32 1, %s737_s13  ;;  %s741_s14 = sphi %s772_s14, %s16_s14   ;;  %s737_s13 = sphi %s770_s13, %s1018_s13   ;;  %s733_s12 = sphi %s768_s12, %s1017_s12   ;;  %s729_s11 = sphi %s766_s11, %s1016_s11   ;;  %s725_s10 = sphi %s764_s10, %s1015_s10   ;;  %s721_s9 = sphi %s762_s9, %s1014_s9  }
   0x5   : > { %p30_p0 = scmp.ge.s32.totalorder %s28_s16, 2  ;;  %s37_s17 = sadd.s32 1, %s729_s11 }
   0x6   : > { %p44_p1 = scmp.ne.s32.totalorder %s729_s11, %s725_s10  ;;  %p45_p2 = scmp.eq.s32.totalorder %s741_s14, 0 }
   0x7   : > { %s1020_s16 = smov (%p30_p0, %s28_s16), 0  ;;  %p50_p4 = scmp.ne.s32.totalorder %s725_s10, %s721_s9 }
   0x8   : > { %p798_p3 = por %p45_p2, %p44_p1  ;;  %s32_s19 = ssub.s32 %s737_s13, %s1020_s16 }
   0x9   : > { %p51_p5 = scmp.eq.s32.totalorder %s584_s15, 0  ;;  %p35_p6 = scmp.eq.s32.totalorder %s32_s19, 0 }
   0xa   : > { %p608_p8 = scmp.lt.s32.totalorder %s741_s14, 2  ;;  %s126_s22 = sand.u32 1, %s729_s11  }
   0xb   : > { %p805_p7 = por %p51_p5, %p50_p4  ;;  %s597_s23 = sshll.u32 %s737_s13, 7 }
   0xc   : > { %s811_s21 = scalar_select %p35_p6, %s729_s11, %s37_s17  }
   0xd   : > { %s588_s24 = sshll.u32 %s126_s22, 7  ;;  %s138_s27 = scalar_lea.hbm %s1009_s0, %s597_s23 }
   0xe   : > { %s139_s28 = sshll.u32 %s138_s27, 4  ;;  %s130_s29 = scalar_lea.vmem [#allocation5], %s588_s24  ;;  %s140_s28 = int_to_ptr.hbm [resolvable:$true] %s139_s28 }
   0xf   : > { %s141_s30 = sshll.u32 %s130_s29, 4  ;;  %p605_p9 = pnand %p608_p8, %p798_p3  ;;  %s142_s30 = int_to_ptr.vmem [resolvable:$true] %s141_s30 }
  0x10   : > { %p592_p10 = scmp.ge.s32.totalorder %s741_s14, 1  ;;  %p149_p11 = scmp.lt.s32.totalorder %s741_s14, 3 }
  0x11   : > { %s127_s3 = scalar_lea.sflag [#allocation6], %s126_s22  ;;  %s743_s4 = smov 128  }
  0x12   : > { %s744_s5 = smov 8   ;;  %p150_p12 = pnand %p592_p10, %p149_p11 }
  0x13   : > { %607 = dma.hbm_to_vmem [thread:$0]  (!%p605_p9), %s140_s28, 2048, %s142_s30, %s127_s3, %s743_s4, %s743_s4, %s744_s5  }
  0x14   : > { %153 = sbr.rel (%p150_p12) target bundleno = 395 (0x18b), region = 24  ;;  %s155_s6 = sand.u32 (!%p150_p12), 1, %s725_s10  }
  0x15   : > { %s593_s7 = sshll.u32 (!%p150_p12), %s155_s6, 7  ;;  %s156_s8 = scalar_lea.sflag (!%p150_p12), [#allocation6], %s155_s6 }
  0x16   : > { %s823_s9 = scalar_lea.vmem (!%p150_p12), [#allocation5], %s593_s7 }
  0x19   : > { %716 = dma.done.wait (%p805_p7), %s156_s8, 2048  }
  0x1a   : > { %718 = vsyncadd (%p805_p7), %s156_s8, 4294965248  ;;  %v830_v0 = vld [vmem:[%s823_s9 + $0x40] sm:$0xff]  ;;  %v836_v2 = vld [vmem:[%s823_s9 + $0x48] sm:$0xff]  ;;  %vm316_vm0 = vcmask 1040384   ;;  %s745_s15 = smov 127   ;;  %vm395_vm1 = vcmask 1047553  }
  0x1b   : > { %v833_v1 = vld [vmem:[%s823_s9] sm:$0xff]  ;;  %228 = vrot.lane.b32.xlu1 %v830_v0, %s745_s15  ;;  %v332_v3 = vrot.slane %v830_v0, 7  ;;  %v333_v5 = vrot.slane %v836_v2, 7  ;;  %v846_v6 = vld [vmem:[%s823_s9 + $0x8] sm:$0xff]  ;;  %v850_v8 = vld [vmem:[%s823_s9 + $0x18] sm:$0xff]  ;;  %vm415_vm2 = vcmask 1046528  }
  0x1c   : > { %212 = vrot.lane.b32.xlu0 %v833_v1, %s745_s15  ;;  %v317_v4 = vrot.slane %v833_v1, 7  ;;  %v318_v7 = vrot.slane %v846_v6, 7  ;;  %v853_v9 = vld [vmem:[%s823_s9 + $0x10] sm:$0xff]  ;;  %v859_v13 = vld [vmem:[%s823_s9 + $0x58] sm:$0xff]  ;;  %v322_v14 = vrot.slane %v850_v8, 7  ;;  %v869_v19 = vld [vmem:[%s823_s9 + $0x60] sm:$0xff] }
  0x1d   : > { %v371_v10 = vsub.f32 %v830_v0, %v332_v3  ;;  %v334_v12 = vsel %vm316_vm0, %v332_v3, %v333_v5  ;;  %216 = vrot.lane.b32.xlu2 %v853_v9, %s745_s15  ;;  %v337_v17 = vrot.slane %v859_v13, 7  ;;  %v320_v18 = vrot.slane %v853_v9, 7  ;;  %v873_v23 = vld [vmem:[%s823_s9 + $0x28] sm:$0xff]  ;;  %v883_v33 = vld [vmem:[%s823_s9 + $0x50] sm:$0xff]  ;;  %v908_v52 = vld [vmem:[%s823_s9 + $0x78] sm:$0xff]  ;;  %p184_p13 = scmp.lt.s32.totalorder %s733_s12, 1 }
  0x1e   : > { %v363_v11 = vsub.f32 %v833_v1, %v317_v4  ;;  %v372_v15 = vsub.f32 %v836_v2, %v334_v12  ;;  %v319_v16 = vsel %vm316_vm0, %v317_v4, %v318_v7  ;;  %v339_v24 = vrot.slane %v869_v19, 7  ;;  %v888_v37 = vld [vmem:[%s823_s9 + $0x70] sm:$0xff]  ;;  %v911_v53 = vld [vmem:[%s823_s9 + $0x20] sm:$0xff]  ;;  %v914_v54 = vld [vmem:[%s823_s9 + $0x68] sm:$0xff] }
  0x1f   : > { %v387_v20 = vmul.f32 %v371_v10, %v371_v10  ;;  %v364_v22 = vsub.f32 %v846_v6, %v319_v16  ;;  %v326_v26 = vrot.slane %v873_v23, 7  ;;  %v321_v27 = vsel %vm316_vm0, %v318_v7, %v320_v18  ;;  %v892_v39 = vld [vmem:[%s823_s9 + $0x30] sm:$0xff]  ;;  %s1022_s12 = smov (!%p184_p13, %s733_s12), 1 }
  0x20   : > { %v379_v21 = vmul.f32 %v363_v11, %v363_v11  ;;  %v388_v25 = vmul.f32 %v372_v15, %v372_v15  ;;  %v323_v28 = vsel %vm316_vm0, %v320_v18, %v322_v14  ;;  %v365_v32 = vsub.f32 %v853_v9, %v321_v27  ;;  %v937_v27 = vld [vmem:[%s823_s9 + $0x38] sm:$0xff]  ;;  %s186_s19 = scalar_lea.vmem %s1010_s1, %s1022_s12  ;;  %s189_s24 = scalar_lea.vmem %s1011_s2, %s1022_s12 }
  0x21   : > { %v397_v29 = vsel %vm395_vm1, %v387_v20, 0.0  ;;  %v380_v31 = vmul.f32 %v364_v22, %v364_v22  ;;  %v366_v35 = vsub.f32 %v850_v8, %v323_v28  ;;  %v340_v36 = vsel %vm316_vm0, %v337_v17, %v339_v24 }
  0x22   : > { %v396_v30 = vsel %vm395_vm1, %v379_v21, 0.0  ;;  %v335_v38 = vrot.slane %v883_v33, 7  ;;  %v375_v41 = vsub.f32 %v869_v19, %v340_v36  ;;  %v343_v42 = vrot.slane %v888_v37, 7 }
  0x23   : > { %v398_v34 = vadd.f32 %v397_v29, %v396_v30  ;;  %230 = vrot.lane.b32.xlu1 %v836_v2, %s745_s15  ;;  %v399_v40 = vadd.f32 %v388_v25, %v380_v31  ;;  %v328_v43 = vrot.slane %v892_v39, 7  ;;  %v381_v45 = vmul.f32 %v365_v32, %v365_v32 }
  0x24   : > { %214 = vrot.lane.b32.xlu0 %v846_v6, %s745_s15  ;;  %v336_v46 = vsel %vm316_vm0, %v333_v5, %v335_v38  ;;  %v338_v47 = vsel %vm316_vm0, %v335_v38, %v337_v17  ;;  %v382_v49 = vmul.f32 %v366_v35, %v366_v35  ;;  %v345_v56 = vrot.slane %v908_v52, 7 }
  0x25   : > { %v416_v44 = vrot.slane %v398_v34, 1  ;;  %v417_v48 = vrot.slane %v399_v40, 1  ;;  %v373_v50 = vsub.f32 %v883_v33, %v336_v46  ;;  %v374_v51 = vsub.f32 %v859_v13, %v338_v47  ;;  %232 = vrot.lane.b32.xlu2 %v883_v33, %s745_s15 }
  0x26   : > { %v329_v55 = vsel %vm316_vm0, %v326_v26, %v328_v43  ;;  %v324_v57 = vrot.slane %v911_v53, 7  ;;  %v341_v58 = vrot.slane %v914_v54, 7  ;;  %v391_v59 = vmul.f32 %v375_v41, %v375_v41 }
  0x27   : > { %v389_v60 = vmul.f32 %v373_v50, %v373_v50  ;;  %v390_v61 = vmul.f32 %v374_v51, %v374_v51  ;;  %v369_v62 = vsub.f32 %v892_v39, %v329_v55  ;;  %v346_v63 = vsel %vm316_vm0, %v343_v42, %v345_v56 }
  0x28   : > { %v325_v3 = vsel %vm316_vm0, %v322_v14, %v324_v57  ;;  %v327_v4 = vsel %vm316_vm0, %v324_v57, %v326_v26  ;;  %v342_v5 = vsel %vm316_vm0, %v339_v24, %v341_v58  ;;  %v418_v7 = vsel %vm415_vm2, %v416_v44, %v417_v48 }
  0x29   : > { %v400_v10 = vadd.f32 %v389_v60, %v381_v45  ;;  %v401_v11 = vadd.f32 %v390_v61, %v382_v49  ;;  %v385_v12 = vmul.f32 %v369_v62, %v369_v62  ;;  %v367_v15 = vsub.f32 %v911_v53, %v325_v3 }
  0x2a   : > { %v368_v16 = vsub.f32 %v873_v23, %v327_v4  ;;  %v344_v17 = vsel %vm316_vm0, %v341_v58, %v343_v42  ;;  %v376_v18 = vsub.f32 %v914_v54, %v342_v5  ;;  %v378_v21 = vsub.f32 %v908_v52, %v346_v63 }
  0x2b   : > { %234 = vrot.lane.b32.xlu1 %v859_v13, %s745_s15  ;;  %v419_v14 = vrot.slane %v400_v10, 1  ;;  %v421_v20 = vrot.slane %v401_v11, 1  ;;  %v377_v22 = vsub.f32 %v888_v37, %v344_v17  ;;  %v383_v24 = vmul.f32 %v367_v15, %v367_v15 }
  0x2c   : > { %218 = vrot.lane.b32.xlu0 %v850_v8, %s745_s15  ;;  %v384_v25 = vmul.f32 %v368_v16, %v368_v16  ;;  %v392_v26 = vmul.f32 %v376_v18, %v376_v18  ;;  %v330_v31 = vrot.slane %v937_v27, 7  ;;  %v746_v32 = vmov 0.0  }
  0x2d   : > { %v420_v28 = vsel %vm415_vm2, %v417_v48, %v419_v14  ;;  %v422_v29 = vsel %vm415_vm2, %v419_v14, %v421_v20  ;;  %220 = vrot.lane.b32.xlu2 %v911_v53, %s745_s15  ;;  %v393_v30 = vmul.f32 %v377_v22, %v377_v22  ;;  %194 = vst [vmem:[#allocation2] sm:$0x1] %v746_v32  ;;  %vm475_vm4 = vcmask 0  }
  0x2e   : > { %v439_v34 = vadd.f32 %v420_v28, %v418_v7  ;;  %v402_v35 = vadd.f32 %v391_v59, %v383_v24  ;;  %v403_v36 = vadd.f32 %v392_v26, %v384_v25  ;;  %195 = vst [vmem:[#allocation3] sm:$0x1] %v746_v32  ;;  %v394_v38 = vmul.f32 %v378_v21, %v378_v21 }
  0x2f   : > { %v404_v40 = vadd.f32 %v393_v30, %v385_v12  ;;  %v331_v41 = vsel %vm316_vm0, %v328_v43, %v330_v31 }
  0x30   : > { %v440_v42 = vadd.f32 %v439_v34, %v422_v29  ;;  %v423_v44 = vrot.slane %v402_v35, 1  ;;  %v425_v45 = vrot.slane %v403_v36, 1  ;;  %v370_v46 = vsub.f32 %v937_v27, %v331_v41 }
  0x31   : > { %v427_v47 = vrot.slane %v404_v40, 1 }
  0x32   : > { %v424_v48 = vsel %vm415_vm2, %v421_v20, %v423_v44  ;;  %v426_v49 = vsel %vm415_vm2, %v423_v44, %v425_v45  ;;  %v386_v50 = vmul.f32 %v370_v46, %v370_v46 }
  0x33   : > { %222 = vrot.lane.b32.xlu1 %v873_v23, %s745_s15  ;;  %v441_v51 = vadd.f32 %v440_v42, %v424_v48  ;;  %v428_v43 = vsel %vm415_vm2, %v425_v45, %v427_v47 }
  0x34   : > { %236 = vrot.lane.b32.xlu0 %v869_v19, %s745_s15  ;;  %v405_v55 = vadd.f32 %v394_v38, %v386_v50  ;;  %v406_v10 = vld [vmem:[#allocation2] sm:$0x1] }
  0x35   : > { %238 = vrot.lane.b32.xlu2 %v914_v54, %s745_s15  ;;  %v442_v56 = vadd.f32 %v441_v51, %v426_v49 }
  0x36   : > { %v429_v57 = vrot.slane %v405_v55, 1 }
  0x37   : > { %v443_v58 = vadd.f32 %v442_v56, %v428_v43 }
  0x38   : > { %v430_v59 = vsel %vm415_vm2, %v427_v47, %v429_v57  ;;  %v445_v60 = vsel %vm415_vm2, %v429_v57, 0.0 }
  0x39   : > { %v444_v61 = vadd.f32 %v443_v58, %v430_v59 }
  0x3b   : > { %240 = vrot.lane.b32.xlu1 %v888_v37, %s745_s15  ;;  %v446_v62 = vadd.f32 %v445_v60, %v444_v61 }
  0x3c   : > { %224 = vrot.lane.b32.xlu0 %v892_v39, %s745_s15 }
  0x3d   : > { %226 = vrot.lane.b32.xlu2 %v937_v27, %s745_s15  ;;  %v447_v63 = vrot.slane %v446_v62, 4 }
  0x3f   : > { %v448_v3 = vadd.f32 %v447_v63, %v446_v62 }
  0x41   : > { %v449_v4 = vrot.slane %v448_v3, 2 }
  0x43   : > { %v450_v5 = vadd.f32 %v449_v4, %v448_v3 }
  0x44   : > { %242 = vrot.lane.b32.xlu0 %v908_v52, %s745_s15 }
  0x45   : > { %v451_v7 = vrot.slane %v450_v5, 1 }
  0x47   : > { %v452_v11 = vadd.f32 %v451_v7, %v450_v5 }
  0x49   : > { %v453_v12 = vadd.f32 %v452_v11, %v406_v10 }
  0x4b   : > { %454 = vst [vmem:[#allocation2] sm:$0x1] %v453_v12 }
  0x52   : > { %v463_v51 = vld [vmem:[#allocation2] sm:$0x1] }
  0x77   : > { %v217_v15 = vpop.permute.xlu2 %216 }
  0x78   : > { %v246_v32 = vsub.f32 %v217_v15, %v853_v9 }
  0x7a   : > { %v262_v44 = vmul.f32 %v246_v32, %v246_v32 }
  0x7f   : > { %v233_v18 = vpop.permute.xlu2 %232 }
  0x80   : > { %v254_v34 = vsub.f32 %v233_v18, %v883_v33 }
  0x82   : > { %v270_v46 = vmul.f32 %v254_v34, %v254_v34 }
  0x84   : > { %v278_v55 = vadd.f32 %v270_v46, %v262_v44 }
  0x87   : > { %v221_v21 = vpop.permute.xlu2 %220 }
  0x8d   : > { %v229_v16 = vpop.permute.xlu1 %228 }
  0x8e   : > { %v213_v17 = vpop.permute.xlu0 %212  ;;  %v252_v28 = vsub.f32 %v229_v16, %v830_v0 }
  0x8f   : > { %v244_v29 = vsub.f32 %v213_v17, %v833_v1  ;;  %v239_v42 = vpop.permute.xlu2 %238 }
  0x90   : > { %v268_v38 = vmul.f32 %v252_v28, %v252_v28 }
  0x91   : > { %v260_v40 = vmul.f32 %v244_v29, %v244_v29 }
  0x93   : > { %v276_v45 = vadd.f32 %v268_v38, %v260_v40 }
  0x95   : > { %v231_v14 = vpop.permute.xlu1 %230 }
  0x96   : > { %v215_v20 = vpop.permute.xlu0 %214  ;;  %v253_v25 = vsub.f32 %v231_v14, %v836_v2 }
  0x97   : > { %v245_v26 = vsub.f32 %v215_v20, %v846_v6  ;;  %v248_v6 = vsub.f32 %v221_v21, %v911_v53  ;;  %v464_v53 = vsel %vm316_vm0, %v463_v51, 0.0  ;;  %v227_v58 = vpop.permute.xlu2 %226 }
  0x98   : > { %v269_v30 = vmul.f32 %v253_v25, %v253_v25  ;;  %465 = vadd.xlane.f32.xlu1 %v464_v53  ;;  %v251_v3 = vsub.f32 %v227_v58, %v937_v27  ;;  %v458_v27 = vlaneseq }
  0x99   : > { %v261_v31 = vmul.f32 %v245_v26, %v245_v26  ;;  %v264_v33 = vmul.f32 %v248_v6, %v248_v6 }
  0x9a   : > { %v267_v11 = vmul.f32 %v251_v3, %v251_v3  ;;  %v459_v28 = vand.u32 127, %v458_v27 }
  0x9b   : > { %v277_v0 = vadd.f32 %v269_v30, %v261_v31 }
  0x9c   : > { %vm460_vm3 = vcmp.lt.s32.totalorder %v459_v28, 127 }
  0x9d   : > { %v235_v22 = vpop.permute.xlu1 %234  ;;  %v285_v48 = vadd.f32 %v277_v0, %v276_v45 }
  0x9e   : > { %v219_v24 = vpop.permute.xlu0 %218  ;;  %v255_v41 = vsub.f32 %v235_v22, %v859_v13  ;;  %v257_v13 = vsub.f32 %v239_v42, %v914_v54 }
  0x9f   : > { %v247_v2 = vsub.f32 %v219_v24, %v850_v8  ;;  %v286_v59 = vadd.f32 %v285_v48, %v278_v55  ;;  %v284_v24 = vld [vmem:[#allocation3] sm:$0x1] }
  0xa0   : > { %v271_v9 = vmul.f32 %v255_v41, %v255_v41 }
  0xa1   : > { %v263_v47 = vmul.f32 %v247_v2, %v247_v2 }
  0xa3   : > { %v279_v56 = vadd.f32 %v271_v9, %v263_v47 }
  0xa5   : > { %v223_v35 = vpop.permute.xlu1 %222  ;;  %v287_v62 = vadd.f32 %v286_v59, %v279_v56 }
  0xa6   : > { %v237_v36 = vpop.permute.xlu0 %236  ;;  %v249_v49 = vsub.f32 %v223_v35, %v873_v23  ;;  %v273_v23 = vmul.f32 %v257_v13, %v257_v13 }
  0xa7   : > { %v256_v1 = vsub.f32 %v237_v36, %v869_v19 }
  0xa8   : > { %v265_v60 = vmul.f32 %v249_v49, %v249_v49 }
  0xa9   : > { %v272_v50 = vmul.f32 %v256_v1, %v256_v1 }
  0xaa   : > { %v281_v5 = vadd.f32 %v273_v23, %v265_v60 }
  0xab   : > { %v280_v61 = vadd.f32 %v272_v50, %v264_v33 }
  0xad   : > { %v241_v8 = vpop.permute.xlu1 %240  ;;  %v288_v4 = vadd.f32 %v287_v62, %v280_v61 }
  0xae   : > { %v225_v43 = vpop.permute.xlu0 %224  ;;  %v258_v19 = vsub.f32 %v241_v8, %v888_v37 }
  0xaf   : > { %v250_v57 = vsub.f32 %v225_v43, %v892_v39  ;;  %v289_v12 = vadd.f32 %v288_v4, %v281_v5 }
  0xb0   : > { %v274_v63 = vmul.f32 %v258_v19, %v258_v19 }
  0xb1   : > { %v266_v54 = vmul.f32 %v250_v57, %v250_v57 }
  0xb3   : > { %v282_v10 = vadd.f32 %v274_v63, %v266_v54 }
  0xb5   : > { %v290_v15 = vadd.f32 %v289_v12, %v282_v10 }
  0xb6   : > { %v243_v7 = vpop.permute.xlu0 %242 }
  0xb7   : > { %v259_v37 = vsub.f32 %v243_v7, %v908_v52 }
  0xb9   : > { %v275_v39 = vmul.f32 %v259_v37, %v259_v37 }
  0xbb   : > { %v283_v16 = vadd.f32 %v275_v39, %v267_v11 }
  0xbd   : > { %v291_v17 = vadd.f32 %v290_v15, %v283_v16 }
  0xbf   : > { %v292_v18 = vrot.slane %v291_v17, 4 }
  0xc1   : > { %v293_v14 = vadd.f32 %v292_v18, %v291_v17 }
  0xc3   : > { %v294_v20 = vrot.slane %v293_v14, 2 }
  0xc5   : > { %v295_v21 = vadd.f32 %v294_v20, %v293_v14 }
  0xc7   : > { %v296_v22 = vrot.slane %v295_v21, 1 }
  0xc9   : > { %v297_v25 = vadd.f32 %v296_v22, %v295_v21 }
  0xcb   : > { %v298_v26 = vadd.f32 %v297_v25, %v284_v24 }
  0xcd   : > { %299 = vst [vmem:[#allocation3] sm:$0x1] %v298_v26 }
  0xd4   : > { %v461_v29 = vld [vmem:[#allocation3] sm:$0x1] }
  0xd5   : > { %v462_v30 = vsel %vm460_vm3, %v461_v29, 0.0 }
  0xd6   : > { %v477_v52 = vsel %vm316_vm0, %v462_v30, 0.0 }
  0xd7   : > { %478 = vadd.xlane.f32.xlu2 %v477_v52 }
 0x10b   : > { %v466_v31 = vpop.xlane.xlu1 %465 }
 0x10c   : > { %v467_v32 = vrot.slane %v466_v31, 4 }
 0x10e   : > { %v468_v34 = vadd.f32 %v467_v32, %v466_v31 }
 0x110   : > { %v469_v35 = vrot.slane %v468_v34, 2 }
 0x112   : > { %v470_v36 = vadd.f32 %v469_v35, %v468_v34 }
 0x114   : > { %v471_v38 = vrot.slane %v470_v36, 1 }
 0x116   : > { %v472_v40 = vadd.f32 %v471_v38, %v470_v36 }
 0x118   : > { %598 = vpush %v472_v40 }
 0x149   : > { %s599_s20 = spop %598 }
 0x14a   : > { %v479_v41 = vpop.xlane.xlu2 %478  ;;  %v474_v45 = vstv %s599_s20 }
 0x14b   : > { %v480_v2 = vrot.slane %v479_v41, 4  ;;  %476 = vst.msk [vmem:[%s186_s19] sm:$0x1] %vm475_vm4, %v474_v45 }
 0x14d   : > { %v481_v6 = vadd.f32 %v480_v2, %v479_v41 }
 0x14f   : > { %v482_v42 = vrot.slane %v481_v6, 2 }
 0x151   : > { %v483_v0 = vadd.f32 %v482_v42, %v481_v6 }
 0x153   : > { %v484_v1 = vrot.slane %v483_v0, 1 }
 0x155   : > { %v485_v44 = vadd.f32 %v484_v1, %v483_v0 }
 0x157   : > { %600 = vpush %v485_v44 }
 0x188   : > { %s601_s25 = spop %600 }
 0x189   : > { %v487_v46 = vstv %s601_s25 }
 0x18a   : > { %488 = vst.msk [vmem:[%s189_s24] sm:$0x1] %vm475_vm4, %v487_v46 }
 0x18b PF: > { %s16_s14 = sadd.s32 1, %s741_s14   ;;  %s1014_s9 = smov %s725_s10 }
 0x18c   : > { %p13_p0 = scmp.ge.s32.totalorder %s16_s14, 4   ;;  %s1015_s10 = smov %s729_s11 }
 0x18d   : > { %s1016_s11 = smov %s811_s21  ;;  %s1017_s12 = smov %s737_s13 }
 0x18e   : > { %s1018_s13 = smov %s1020_s16  ;;  %15 = sbr.rel (!%p13_p0) target bundleno = 4 (0x4), region = 84 }
 0x193   :  { %518 = vsyncpa [#allocation6], 1 }
 0x194   :  { %520 = vsyncpa [#allocation6 + $0x1], 1 }

</bundles_post_ra>
